<compile_context>
chip_gen: v5e
topology: v5e:2x2
jax: 0.10.0
libtpu: 0.0.40
codegen_flags: <defaults>
</compile_context>

<pallas_src>
import functools

import jax
import jax.numpy as jnp
from jax import lax
from jax.experimental import pallas as pl
from jax.experimental.pallas import tpu as pltpu


def rnn_kernel(T, x_ref, wih_ref, whh_ref, b_ref, wfc_ref, bfc_ref, out_ref,
               xproj_ref):
    # x_ref:     (T*Bp, I)  time-major rows (t slow, batch fast), MXU dtype
    # wih_ref:   (I, Hp)    whh_ref: (Hp, Hp)   (MXU dtype, pre-transposed, lane-padded)
    # b_ref:     (1, Hp) f32 (= b_ih + b_hh, lane-padded)
    # wfc_ref:   (Hp, Op)   bfc_ref: (1, Op) f32
    # out_ref:   (Bp, Op) f32
    # xproj_ref: (T*Bp, Hp) f32 VMEM scratch
    Bp = out_ref.shape[0]
    Hp = whh_ref.shape[0]
    mxu_dtype = whh_ref.dtype

    # Phase 1: hoisted input projection for ALL time steps in one MXU GEMM,
    # staged into VMEM scratch (bounds vreg pressure to one (Bp, Hp) tile/step).
    xproj_ref[...] = (
        jnp.dot(x_ref[...], wih_ref[...], preferred_element_type=jnp.float32)
        + b_ref[...]
    )

    # Phase 2: inherently serial Elman recurrence. W_hh stays resident in vregs
    # across all steps; per-step xproj loads are contiguous and sublane-aligned
    # (Bp is a multiple of 8). Elementwise math (add, tanh) stays in f32.
    whh = whh_ref[...]

    def step(t, h):
        row0 = pl.multiple_of(t * Bp, 8)
        xp = xproj_ref[pl.ds(row0, Bp), :]
        z = jnp.dot(h.astype(mxu_dtype), whh,
                    preferred_element_type=jnp.float32) + xp
        return jnp.tanh(z)

    h0 = jnp.zeros((Bp, Hp), jnp.float32)
    h = lax.fori_loop(0, T, step, h0, unroll=True)

    # Phase 3: fc projection of the last hidden state (lane-dense output store).
    out_ref[...] = (
        jnp.dot(h.astype(mxu_dtype), wfc_ref[...],
                preferred_element_type=jnp.float32)
        + bfc_ref[...]
    ).astype(out_ref.dtype)


def rnn_forward(x, w_ih, w_hh, b_ih, b_hh, w_fc, b_fc,
                mxu_dtype=jnp.bfloat16):
    """x: (B, T, I) float32, batch_first. Returns (B, O) == fc(rnn(x)[0][:, -1, :]).

    mxu_dtype: operand dtype fed to the three GEMMs (accumulation is always f32).
    bf16 operands give ~3x fewer MXU passes on v6e/v7x; pass jnp.float32 for
    exact-match validation.
    """
    B, T, I = x.shape
    H = w_ih.shape[0]
    O = w_fc.shape[0]
    f32 = jnp.float32

    SUB, LANE = 8, 128
    Bp = ((B + SUB - 1) // SUB) * SUB      # f32 sublane multiple
    Hp = ((H + LANE - 1) // LANE) * LANE   # lane-dense hidden width
    Op = ((O + LANE - 1) // LANE) * LANE   # lane-dense output width

    # Batch pad + time-major 2-D layout: each time step is one contiguous,
    # sublane-aligned row block of size Bp. Padded rows never couple to real
    # rows (the recurrence only mixes over H) and are sliced off at the end.
    x_p = jnp.zeros((Bp, T, I), f32).at[:B].set(x.astype(f32))
    # TODO(synk): at non-toy T*B this transpose is an extra HBM pass on x; fold
    # the reorder into a chunked (over t) Phase-1 pipeline feeding the scratch.
    x2d = x_p.transpose(1, 0, 2).reshape(T * Bp, I).astype(mxu_dtype)

    # Pre-transpose weights, pre-sum RNN biases, zero-pad H/O to 128 lanes.
    # Padded hidden lanes stay exactly 0 through the recurrence: their
    # pre-activation is 0 (zero W_ih cols / W_hh rows+cols / bias) and tanh(0)=0.
    wih_t = jnp.zeros((I, Hp), f32).at[:, :H].set(w_ih.T).astype(mxu_dtype)
    whh_t = jnp.zeros((Hp, Hp), f32).at[:H, :H].set(w_hh.T).astype(mxu_dtype)
    b = jnp.zeros((1, Hp), f32).at[0, :H].set(b_ih + b_hh)
    wfc_t = jnp.zeros((Hp, Op), f32).at[:H, :O].set(w_fc.T).astype(mxu_dtype)
    bfc = jnp.zeros((1, Op), f32).at[0, :O].set(b_fc)

    # VMEM budget: everything (input, weights, xproj scratch, output) is
    # resident for the single invocation; size the scoped limit accordingly
    # (v5e scoped default is 16 MiB; v7x physical VMEM is 64 MiB per TC).
    isz = jnp.dtype(mxu_dtype).itemsize
    resident = (
        (T * Bp * I + I * Hp + Hp * Hp + Hp * Op) * isz   # MXU-dtype operands
        + (Hp + Op) * 4                                   # biases
        + (Bp * Op) * 4                                   # output
        + (T * Bp * Hp) * 4                               # xproj scratch
    )
    vmem_limit = int(min(64 * 2**20, max(16 * 2**20, 2 * resident + 2 * 2**20)))

    vmem = pl.BlockSpec(memory_space=pltpu.MemorySpace.VMEM)
    out_p = pl.pallas_call(
        functools.partial(rnn_kernel, T),
        out_shape=jax.ShapeDtypeStruct((Bp, Op), f32),
        in_specs=[vmem] * 6,
        out_specs=vmem,
        scratch_shapes=[pltpu.VMEM((T * Bp, Hp), jnp.float32)],
        compiler_params=pltpu.CompilerParams(vmem_limit_bytes=vmem_limit),
    )(x2d, wih_t, whh_t, b, wfc_t, bfc)

    return out_p[:B, :O]


def rnn_reference(x, w_ih, w_hh, b_ih, b_hh, w_fc, b_fc):
    """Pure-JAX reference matching torch.nn.RNN(batch_first=True) + Linear."""
    B, T, I = x.shape
    H = w_ih.shape[0]
    h = jnp.zeros((B, H), jnp.float32)
    for t in range(T):
        h = jnp.tanh(x[:, t, :] @ w_ih.T + b_ih + h @ w_hh.T + b_hh)
    return h @ w_fc.T + b_fc


if __name__ == "__main__":
    # Small shapes consistent with the module's forward:
    B, T, I, H, O = 2, 8, 16, 32, 4   # batch, seq, input_size, hidden_size, output_steps

    key = jax.random.PRNGKey(0)
    kx, k1, k2, k3, k4, k5, k6 = jax.random.split(key, 7)

    x = jax.random.normal(kx, (B, T, I), dtype=jnp.float32)

    # Deterministic parameter init (PyTorch-style uniform(-1/sqrt(H), 1/sqrt(H))).
    s = 1.0 / jnp.sqrt(jnp.float32(H))
    w_ih = jax.random.uniform(k1, (H, I), jnp.float32, -s, s)
    w_hh = jax.random.uniform(k2, (H, H), jnp.float32, -s, s)
    b_ih = jax.random.uniform(k3, (H,), jnp.float32, -s, s)
    b_hh = jax.random.uniform(k4, (H,), jnp.float32, -s, s)
    w_fc = jax.random.uniform(k5, (O, H), jnp.float32, -s, s)
    b_fc = jax.random.uniform(k6, (O,), jnp.float32, -s, s)

    ref = rnn_reference(x, w_ih, w_hh, b_ih, b_hh, w_fc, b_fc)

    # Exact path (f32 MXU operands): validates kernel structure bit-tightly.
    out_f32 = jax.block_until_ready(
        rnn_forward(x, w_ih, w_hh, b_ih, b_hh, w_fc, b_fc,
                    mxu_dtype=jnp.float32))
    assert out_f32.shape == (B, O)
    assert jnp.allclose(out_f32, ref, atol=1e-5, rtol=1e-5), "f32 path mismatch"

    # Perf path (bf16 MXU operands, f32 accumulation / elementwise): looser tol.
    out_bf16 = jax.block_until_ready(
        rnn_forward(x, w_ih, w_hh, b_ih, b_hh, w_fc, b_fc,
                    mxu_dtype=jnp.bfloat16))
    assert out_bf16.shape == (B, O)
    assert jnp.allclose(out_bf16, ref, atol=2e-2, rtol=2e-2), "bf16 path mismatch"

    print("KERNEL_OK")
</pallas_src>

<mosaic_0001>
module attributes {stable_mosaic.version = 11 : i64} {
  func.func @rnn_kernel(%arg0: memref<64x16xf32, #tpu.memory_space<vmem>>, %arg1: memref<16x128xf32, #tpu.memory_space<vmem>>, %arg2: memref<128x128xf32, #tpu.memory_space<vmem>>, %arg3: memref<1x128xf32, #tpu.memory_space<vmem>>, %arg4: memref<128x128xf32, #tpu.memory_space<vmem>>, %arg5: memref<1x128xf32, #tpu.memory_space<vmem>>, %arg6: memref<8x128xf32, #tpu.memory_space<vmem>>, %arg7: memref<64x128xf32, #tpu.memory_space<vmem>>) attributes {dimension_semantics = [], scalar_prefetch = 0 : i64, scratch_operands = 1 : i64, tpu.core_type = #tpu.core_type<tc>} {
    %c0 = arith.constant 0 : index
    %c0_0 = arith.constant 0 : index
    %0 = vector.load %arg0[%c0, %c0_0] : memref<64x16xf32, #tpu.memory_space<vmem>>, vector<64x16xf32>
    %c0_1 = arith.constant 0 : index
    %c0_2 = arith.constant 0 : index
    %1 = vector.load %arg1[%c0_1, %c0_2] : memref<16x128xf32, #tpu.memory_space<vmem>>, vector<16x128xf32>
    %cst = arith.constant dense<0.000000e+00> : vector<64x128xf32>
    %2 = tpu.matmul %0, %1, %cst {dimension_numbers = #tpu.dot_dimension_numbers<[1], [0], [0], [1], [0, 0, 1, 1], [], []>} : vector<64x16xf32>, vector<16x128xf32>, vector<64x128xf32> -> vector<64x128xf32>
    %c0_3 = arith.constant 0 : index
    %c0_4 = arith.constant 0 : index
    %3 = vector.load %arg3[%c0_3, %c0_4] : memref<1x128xf32, #tpu.memory_space<vmem>>, vector<1x128xf32>
    %4 = vector.broadcast %3 : vector<1x128xf32> to vector<64x128xf32>
    %5 = arith.addf %2, %4 : vector<64x128xf32>
    %c0_5 = arith.constant 0 : index
    %c0_6 = arith.constant 0 : index
    %6 = vector.load %arg7[%c0_5, %c0_6] : memref<64x128xf32, #tpu.memory_space<vmem>>, vector<64x128xf32>
    tpu.vector_store %arg7[%c0_5, %c0_6], %5 {strides = array<i32>} : memref<64x128xf32, #tpu.memory_space<vmem>>, vector<64x128xf32>,
    %c0_7 = arith.constant 0 : index
    %c0_8 = arith.constant 0 : index
    %7 = vector.load %arg2[%c0_7, %c0_8] : memref<128x128xf32, #tpu.memory_space<vmem>>, vector<128x128xf32>
    %cst_9 = arith.constant 0.000000e+00 : f32
    %8 = vector.broadcast %cst_9 : f32 to vector<8x128xf32>
    %c0_i32 = arith.constant 0 : i32
    %c8_i32 = arith.constant 8 : i32
    %9 = arith.muli %c0_i32, %c8_i32 : i32
    %10 = tpu.assume_multiple %9, 8 : i32
    %11 = arith.index_cast %10 : i32 to index
    %c0_10 = arith.constant 0 : index
    %12 = vector.load %arg7[%11, %c0_10] : memref<64x128xf32, #tpu.memory_space<vmem>>, vector<8x128xf32>
    %cst_11 = arith.constant dense<0.000000e+00> : vector<8x128xf32>
    %13 = tpu.matmul %8, %7, %cst_11 {dimension_numbers = #tpu.dot_dimension_numbers<[1], [0], [0], [1], [0, 0, 1, 1], [], []>} : vector<8x128xf32>, vector<128x128xf32>, vector<8x128xf32> -> vector<8x128xf32>
    %14 = arith.addf %13, %12 : vector<8x128xf32>
    %15 = math.tanh %14 : vector<8x128xf32>
    %c1_i32 = arith.constant 1 : i32
    %c8_i32_12 = arith.constant 8 : i32
    %16 = arith.muli %c1_i32, %c8_i32_12 : i32
    %17 = tpu.assume_multiple %16, 8 : i32
    %18 = arith.index_cast %17 : i32 to index
    %c0_13 = arith.constant 0 : index
    %19 = vector.load %arg7[%18, %c0_13] : memref<64x128xf32, #tpu.memory_space<vmem>>, vector<8x128xf32>
    %cst_14 = arith.constant dense<0.000000e+00> : vector<8x128xf32>
    %20 = tpu.matmul %15, %7, %cst_14 {dimension_numbers = #tpu.dot_dimension_numbers<[1], [0], [0], [1], [0, 0, 1, 1], [], []>} : vector<8x128xf32>, vector<128x128xf32>, vector<8x128xf32> -> vector<8x128xf32>
    %21 = arith.addf %20, %19 : vector<8x128xf32>
    %22 = math.tanh %21 : vector<8x128xf32>
    %c2_i32 = arith.constant 2 : i32
    %c8_i32_15 = arith.constant 8 : i32
    %23 = arith.muli %c2_i32, %c8_i32_15 : i32
    %24 = tpu.assume_multiple %23, 8 : i32
    %25 = arith.index_cast %24 : i32 to index
    %c0_16 = arith.constant 0 : index
    %26 = vector.load %arg7[%25, %c0_16] : memref<64x128xf32, #tpu.memory_space<vmem>>, vector<8x128xf32>
    %cst_17 = arith.constant dense<0.000000e+00> : vector<8x128xf32>
    %27 = tpu.matmul %22, %7, %cst_17 {dimension_numbers = #tpu.dot_dimension_numbers<[1], [0], [0], [1], [0, 0, 1, 1], [], []>} : vector<8x128xf32>, vector<128x128xf32>, vector<8x128xf32> -> vector<8x128xf32>
    %28 = arith.addf %27, %26 : vector<8x128xf32>
    %29 = math.tanh %28 : vector<8x128xf32>
    %c3_i32 = arith.constant 3 : i32
    %c8_i32_18 = arith.constant 8 : i32
    %30 = arith.muli %c3_i32, %c8_i32_18 : i32
    %31 = tpu.assume_multiple %30, 8 : i32
    %32 = arith.index_cast %31 : i32 to index
    %c0_19 = arith.constant 0 : index
    %33 = vector.load %arg7[%32, %c0_19] : memref<64x128xf32, #tpu.memory_space<vmem>>, vector<8x128xf32>
    %cst_20 = arith.constant dense<0.000000e+00> : vector<8x128xf32>
    %34 = tpu.matmul %29, %7, %cst_20 {dimension_numbers = #tpu.dot_dimension_numbers<[1], [0], [0], [1], [0, 0, 1, 1], [], []>} : vector<8x128xf32>, vector<128x128xf32>, vector<8x128xf32> -> vector<8x128xf32>
    %35 = arith.addf %34, %33 : vector<8x128xf32>
    %36 = math.tanh %35 : vector<8x128xf32>
    %c4_i32 = arith.constant 4 : i32
    %c8_i32_21 = arith.constant 8 : i32
    %37 = arith.muli %c4_i32, %c8_i32_21 : i32
    %38 = tpu.assume_multiple %37, 8 : i32
    %39 = arith.index_cast %38 : i32 to index
    %c0_22 = arith.constant 0 : index
    %40 = vector.load %arg7[%39, %c0_22] : memref<64x128xf32, #tpu.memory_space<vmem>>, vector<8x128xf32>
    %cst_23 = arith.constant dense<0.000000e+00> : vector<8x128xf32>
    %41 = tpu.matmul %36, %7, %cst_23 {dimension_numbers = #tpu.dot_dimension_numbers<[1], [0], [0], [1], [0, 0, 1, 1], [], []>} : vector<8x128xf32>, vector<128x128xf32>, vector<8x128xf32> -> vector<8x128xf32>
    %42 = arith.addf %41, %40 : vector<8x128xf32>
    %43 = math.tanh %42 : vector<8x128xf32>
    %c5_i32 = arith.constant 5 : i32
    %c8_i32_24 = arith.constant 8 : i32
    %44 = arith.muli %c5_i32, %c8_i32_24 : i32
    %45 = tpu.assume_multiple %44, 8 : i32
    %46 = arith.index_cast %45 : i32 to index
    %c0_25 = arith.constant 0 : index
    %47 = vector.load %arg7[%46, %c0_25] : memref<64x128xf32, #tpu.memory_space<vmem>>, vector<8x128xf32>
    %cst_26 = arith.constant dense<0.000000e+00> : vector<8x128xf32>
    %48 = tpu.matmul %43, %7, %cst_26 {dimension_numbers = #tpu.dot_dimension_numbers<[1], [0], [0], [1], [0, 0, 1, 1], [], []>} : vector<8x128xf32>, vector<128x128xf32>, vector<8x128xf32> -> vector<8x128xf32>
    %49 = arith.addf %48, %47 : vector<8x128xf32>
    %50 = math.tanh %49 : vector<8x128xf32>
    %c6_i32 = arith.constant 6 : i32
    %c8_i32_27 = arith.constant 8 : i32
    %51 = arith.muli %c6_i32, %c8_i32_27 : i32
    %52 = tpu.assume_multiple %51, 8 : i32
    %53 = arith.index_cast %52 : i32 to index
    %c0_28 = arith.constant 0 : index
    %54 = vector.load %arg7[%53, %c0_28] : memref<64x128xf32, #tpu.memory_space<vmem>>, vector<8x128xf32>
    %cst_29 = arith.constant dense<0.000000e+00> : vector<8x128xf32>
    %55 = tpu.matmul %50, %7, %cst_29 {dimension_numbers = #tpu.dot_dimension_numbers<[1], [0], [0], [1], [0, 0, 1, 1], [], []>} : vector<8x128xf32>, vector<128x128xf32>, vector<8x128xf32> -> vector<8x128xf32>
    %56 = arith.addf %55, %54 : vector<8x128xf32>
    %57 = math.tanh %56 : vector<8x128xf32>
    %c7_i32 = arith.constant 7 : i32
    %c8_i32_30 = arith.constant 8 : i32
    %58 = arith.muli %c7_i32, %c8_i32_30 : i32
    %59 = tpu.assume_multiple %58, 8 : i32
    %60 = arith.index_cast %59 : i32 to index
    %c0_31 = arith.constant 0 : index
    %61 = vector.load %arg7[%60, %c0_31] : memref<64x128xf32, #tpu.memory_space<vmem>>, vector<8x128xf32>
    %cst_32 = arith.constant dense<0.000000e+00> : vector<8x128xf32>
    %62 = tpu.matmul %57, %7, %cst_32 {dimension_numbers = #tpu.dot_dimension_numbers<[1], [0], [0], [1], [0, 0, 1, 1], [], []>} : vector<8x128xf32>, vector<128x128xf32>, vector<8x128xf32> -> vector<8x128xf32>
    %63 = arith.addf %62, %61 : vector<8x128xf32>
    %64 = math.tanh %63 : vector<8x128xf32>
    %c8_i32_33 = arith.constant 8 : i32
    %c0_34 = arith.constant 0 : index
    %c0_35 = arith.constant 0 : index
    %65 = vector.load %arg4[%c0_34, %c0_35] : memref<128x128xf32, #tpu.memory_space<vmem>>, vector<128x128xf32>
    %cst_36 = arith.constant dense<0.000000e+00> : vector<8x128xf32>
    %66 = tpu.matmul %64, %65, %cst_36 {dimension_numbers = #tpu.dot_dimension_numbers<[1], [0], [0], [1], [0, 0, 1, 1], [], []>} : vector<8x128xf32>, vector<128x128xf32>, vector<8x128xf32> -> vector<8x128xf32>
    %c0_37 = arith.constant 0 : index
    %c0_38 = arith.constant 0 : index
    %67 = vector.load %arg5[%c0_37, %c0_38] : memref<1x128xf32, #tpu.memory_space<vmem>>, vector<1x128xf32>
    %68 = vector.broadcast %67 : vector<1x128xf32> to vector<8x128xf32>
    %69 = arith.addf %66, %68 : vector<8x128xf32>
    %c0_39 = arith.constant 0 : index
    %c0_40 = arith.constant 0 : index
    %70 = vector.load %arg6[%c0_39, %c0_40] : memref<8x128xf32, #tpu.memory_space<vmem>>, vector<8x128xf32>
    tpu.vector_store %arg6[%c0_39, %c0_40], %69 {strides = array<i32>} : memref<8x128xf32, #tpu.memory_space<vmem>>, vector<8x128xf32>,
    return
  }
}

</mosaic_0001>

<bundles_post_ra>
// kernel: tpu_custom_call.1
= control target key start
LH: loop header
LB: loop body
LE: loop exit
PB: predicated region body
PF: predicated region fallthrough
CT: control target
= control target key end

     0   :  { %11 = vsyncpa [#allocation4], 0  ;;  %s776_s0 = inlined_call_operand.vmem [shape: f32[64,16], index: 0, kind: input, shape index: {}]   ;;  %s777_s1 = inlined_call_operand.vmem [shape: f32[16,128], index: 1, kind: input, shape index: {}]   ;;  %s778_s2 = inlined_call_operand.hbm [shape: f32[128,128], index: 2, kind: input, shape index: {}]   ;;  %s779_s3 = inlined_call_operand.vmem [shape: f32[1,128], index: 3, kind: input, shape index: {}]   ;;  %s780_s4 = inlined_call_operand.hbm [shape: f32[128,128], index: 4, kind: input, shape index: {}]   ;;  %s781_s5 = inlined_call_operand.vmem [shape: f32[1,128], index: 5, kind: input, shape index: {}]   ;;  %s782_s6 = inlined_call_operand.hbm [shape: f32[8,128], index: 6, kind: output, shape index: {}]  }
   0x1   :  { %12 = vsyncpa [#allocation7], 0 }
   0x2   :  { %13 = vsyncpa [#allocation5], 0  ;;  %s22_s23 = sshll.u32 %s778_s2, 4  ;;  %s512_s24 = smov [#allocation3]   ;;  %s23_s23 = int_to_ptr.hbm [resolvable:$true] %s22_s23 }
   0x3   :  { %s24_s25 = sshll.u32 %s512_s24, 4  ;;  %s37_s28 = sshll.u32 %s780_s4, 4  ;;  %s25_s25 = int_to_ptr.vmem [resolvable:$true] %s24_s25  ;;  %s38_s28 = int_to_ptr.hbm [resolvable:$true] %s37_s28 }
   0x4   :  { %s513_s29 = smov 128   ;;  %s514_s30 = smov 8  }
   0x5   :  { %30 = dma.hbm_to_vmem [thread:$0]  %s23_s23, 2048, %s25_s25, [#allocation4], %s513_s29, %s513_s29, %s514_s30  }
   0x6   :  { %s515_s7 = smov [#allocation6]  }
   0x7   :  { %s39_s8 = sshll.u32 %s515_s7, 4  ;;  %s40_s8 = int_to_ptr.vmem [resolvable:$true] %s39_s8 }
   0x8   :  { %45 = dma.hbm_to_vmem [thread:$0]  %s38_s28, 2048, %s40_s8, [#allocation7], %s513_s29, %s513_s29, %s514_s30  }
   0x9   :  { %506 = dma.done.wait [#allocation4], 2048  }
   0xa   :  { %507 = vsyncadd [#allocation4], 4294965248 }
   0xb   :  { %508 = dma.done.wait [#allocation7], 2048  }
   0xc   :  { %509 = vsyncadd [#allocation7], 4294965248  ;;  %v559_v0 = vld [vmem:[#allocation3 + $0x78] sm:$0xff]  ;;  %v561_v1 = vld [vmem:[#allocation3 + $0x70] sm:$0xff]  ;;  %vm70_vm0 = vcmask 130048   ;;  %v516_v19 = vmov 0.0  }
   0xd   :  { %161 = vmatpush.msra.mxu1 %v559_v0  ;;  %184 = vmatpush.msra.mxu2 %v559_v0  ;;  %v565_v2 = vld [vmem:[#allocation3 + $0x68] sm:$0xff]  ;;  %v570_v3 = vld [vmem:[#allocation3 + $0x60] sm:$0xff]  ;;  %v583_v7 = vld [vmem:[#allocation3 + $0x58] sm:$0xff]  ;;  %s517_s28 = smov [#allocation8]   ;;  %s391_s8 = sshll.u32 %s782_s6, 4  ;;  %s392_s8 = int_to_ptr.hbm [resolvable:$true] %s391_s8 }
   0xe   :  { %207 = vmatpush.msra.mxu3 %v559_v0  ;;  %v65_v4 = vld [vmem:[%s777_s1 + $0x8] sm:$0xff]  ;;  %v64_v5 = vld [vmem:[%s777_s1] sm:$0xff]  ;;  %v588_v8 = vld [vmem:[#allocation3 + $0x50] sm:$0xff]  ;;  %s389_s29 = sshll.u32 %s517_s28, 4  ;;  %s390_s29 = int_to_ptr.vmem [resolvable:$true] %s389_s29 }
   0xf   :  { %162 = vmatpush.msra.mxu1 %v561_v1  ;;  %185 = vmatpush.msra.mxu2 %v561_v1  ;;  %v56_v6 = vld [vmem:[%s776_s0] sm:$0xff]  ;;  %v594_v9 = vld [vmem:[#allocation3 + $0x48] sm:$0xff]  ;;  %v606_v11 = vld [vmem:[#allocation3 + $0x38] sm:$0xff] }
  0x10   :  { %208 = vmatpush.msra.mxu3 %v561_v1  ;;  %109 = vmatpush.msra.mxu0 %v65_v4  ;;  %v600_v10 = vld [vmem:[#allocation3 + $0x40] sm:$0xff]  ;;  %v612_v12 = vld [vmem:[#allocation3 + $0x30] sm:$0xff]  ;;  %v618_v13 = vld [vmem:[#allocation3 + $0x28] sm:$0xff] }
  0x11   :  { %163 = vmatpush.msra.mxu1 %v565_v2  ;;  %186 = vmatpush.msra.mxu2 %v565_v2  ;;  %v624_v14 = vld [vmem:[#allocation3 + $0x20] sm:$0xff]  ;;  %v630_v15 = vld [vmem:[#allocation3 + $0x18] sm:$0xff]  ;;  %v636_v16 = vld [vmem:[#allocation3 + $0x10] sm:$0xff] }
  0x12   :  { %209 = vmatpush.msra.mxu3 %v565_v2  ;;  %110 = vmatpush.msra.mxu0 %v64_v5  ;;  %v642_v17 = vld [vmem:[#allocation3 + $0x8] sm:$0xff]  ;;  %v648_v18 = vld [vmem:[#allocation3] sm:$0xff]  ;;  %v58_v27 = vld [vmem:[%s776_s0 + $0x10] sm:$0xff] }
  0x13   :  { %164 = vmatpush.msra.mxu1 %v570_v3  ;;  %402 = vmatmul.msk.f32.vlgmr.msra.gmra.mxu0 %vm70_vm0, %v56_v6  ;;  %v57_v20 = vld [vmem:[%s776_s0 + $0x8] sm:$0xff]  ;;  %v736_v21 = vld [vmem:[%s779_s3] ss:$0 sm:$0xff]  ;;  %v59_v33 = vld [vmem:[%s776_s0 + $0x18] sm:$0xff] }
  0x14   :  { %187 = vmatpush.msra.mxu2 %v570_v3  ;;  %210 = vmatpush.msra.mxu3 %v570_v3  ;;  %v60_v39 = vld [vmem:[%s776_s0 + $0x20] sm:$0xff]  ;;  %v61_v45 = vld [vmem:[%s776_s0 + $0x28] sm:$0xff]  ;;  %v62_v46 = vld [vmem:[%s776_s0 + $0x30] sm:$0xff] }
  0x15   :  { %165 = vmatpush.msra.mxu1 %v583_v7  ;;  %299 = vmatpush.msrb.mxu0 %v559_v0  ;;  %v63_v52 = vld [vmem:[%s776_s0 + $0x38] sm:$0xff]  ;;  %v357_v59 = vld [vmem:[#allocation6 + $0x70] sm:$0xff]  ;;  %v356_v61 = vld [vmem:[#allocation6 + $0x68] sm:$0xff] }
  0x16   :  { %188 = vmatpush.msra.mxu2 %v583_v7  ;;  %211 = vmatpush.msra.mxu3 %v583_v7  ;;  %v358_v58 = vld [vmem:[#allocation6 + $0x78] sm:$0xff]  ;;  %v355_v62 = vld [vmem:[#allocation6 + $0x60] sm:$0xff]  ;;  %v349_v5 = vld [vmem:[#allocation6 + $0x30] sm:$0xff] }
  0x17   :  { %166 = vmatpush.msra.mxu1 %v588_v8  ;;  %300 = vmatpush.msrb.mxu0 %v561_v1  ;;  %v354_v63 = vld [vmem:[#allocation6 + $0x58] sm:$0xff]  ;;  %v348_v6 = vld [vmem:[#allocation6 + $0x28] sm:$0xff] }
  0x18   :  { %189 = vmatpush.msra.mxu2 %v588_v8  ;;  %212 = vmatpush.msra.mxu3 %v588_v8  ;;  %v350_v4 = vld [vmem:[#allocation6 + $0x38] sm:$0xff] }
  0x19   :  { %167 = vmatpush.msra.mxu1 %v594_v9  ;;  %301 = vmatpush.msrb.mxu0 %v565_v2 }
  0x1a   :  { %190 = vmatpush.msra.mxu2 %v594_v9  ;;  %213 = vmatpush.msra.mxu3 %v594_v9 }
  0x1b   :  { %168 = vmatpush.msra.mxu1 %v600_v10  ;;  %302 = vmatpush.msrb.mxu0 %v570_v3 }
  0x1c   :  { %191 = vmatpush.msra.mxu2 %v600_v10  ;;  %214 = vmatpush.msra.mxu3 %v600_v10 }
  0x1d   :  { %169 = vmatpush.msra.mxu1 %v606_v11  ;;  %303 = vmatpush.msrb.mxu0 %v583_v7 }
  0x1e   :  { %192 = vmatpush.msra.mxu2 %v606_v11  ;;  %215 = vmatpush.msra.mxu3 %v606_v11 }
  0x1f   :  { %170 = vmatpush.msra.mxu1 %v612_v12  ;;  %304 = vmatpush.msrb.mxu0 %v588_v8 }
  0x20   :  { %193 = vmatpush.msra.mxu2 %v612_v12  ;;  %216 = vmatpush.msra.mxu3 %v612_v12 }
  0x21   :  { %171 = vmatpush.msra.mxu1 %v618_v13  ;;  %305 = vmatpush.msrb.mxu0 %v594_v9 }
  0x22   :  { %194 = vmatpush.msra.mxu2 %v618_v13  ;;  %217 = vmatpush.msra.mxu3 %v618_v13 }
  0x23   :  { %172 = vmatpush.msra.mxu1 %v624_v14  ;;  %306 = vmatpush.msrb.mxu0 %v600_v10 }
  0x24   :  { %195 = vmatpush.msra.mxu2 %v624_v14  ;;  %218 = vmatpush.msra.mxu3 %v624_v14 }
  0x25   :  { %173 = vmatpush.msra.mxu1 %v630_v15  ;;  %307 = vmatpush.msrb.mxu0 %v606_v11 }
  0x26   :  { %196 = vmatpush.msra.mxu2 %v630_v15  ;;  %219 = vmatpush.msra.mxu3 %v630_v15 }
  0x27   :  { %174 = vmatpush.msra.mxu1 %v636_v16  ;;  %308 = vmatpush.msrb.mxu0 %v612_v12 }
  0x28   :  { %197 = vmatpush.msra.mxu2 %v636_v16  ;;  %220 = vmatpush.msra.mxu3 %v636_v16 }
  0x29   :  { %175 = vmatpush.msra.mxu1 %v642_v17  ;;  %309 = vmatpush.msrb.mxu0 %v618_v13 }
  0x2a   :  { %198 = vmatpush.msra.mxu2 %v642_v17  ;;  %221 = vmatpush.msra.mxu3 %v642_v17 }
  0x2b   :  { %176 = vmatpush.msra.mxu1 %v648_v18  ;;  %310 = vmatpush.msrb.mxu0 %v624_v14 }
  0x2c   :  { %177 = vmatmul.f32.vlgmr.msra.gmra.mxu1 %v516_v19  ;;  %199 = vmatpush.msra.mxu2 %v648_v18 }
  0x2d   :  { %222 = vmatpush.msra.mxu3 %v648_v18  ;;  %230 = vmatpush.msrb.mxu1 %v559_v0 }
  0x2e   :  { %253 = vmatpush.msrb.mxu2 %v559_v0  ;;  %311 = vmatpush.msrb.mxu0 %v630_v15 }
  0x2f   :  { %276 = vmatpush.msrb.mxu3 %v559_v0  ;;  %231 = vmatpush.msrb.mxu1 %v561_v1 }
  0x30   :  { %254 = vmatpush.msrb.mxu2 %v561_v1  ;;  %312 = vmatpush.msrb.mxu0 %v636_v16 }
  0x31   :  { %277 = vmatpush.msrb.mxu3 %v561_v1  ;;  %232 = vmatpush.msrb.mxu1 %v565_v2 }
  0x32   :  { %255 = vmatpush.msrb.mxu2 %v565_v2  ;;  %313 = vmatpush.msrb.mxu0 %v642_v17 }
  0x33   :  { %278 = vmatpush.msrb.mxu3 %v565_v2  ;;  %233 = vmatpush.msrb.mxu1 %v570_v3 }
  0x34   :  { %256 = vmatpush.msrb.mxu2 %v570_v3  ;;  %314 = vmatpush.msrb.mxu0 %v648_v18 }
  0x35   :  { %279 = vmatpush.msrb.mxu3 %v570_v3  ;;  %234 = vmatpush.msrb.mxu1 %v583_v7 }
  0x36   :  { %257 = vmatpush.msrb.mxu2 %v583_v7  ;;  %403 = vmatmul.msk.f32.gmra.mxu0 %vm70_vm0, %v57_v20  ;;  %v417_v20 = vld [vmem:[%s781_s5] ss:$0 sm:$0xff] }
  0x37   :  { %280 = vmatpush.msrb.mxu3 %v583_v7  ;;  %235 = vmatpush.msrb.mxu1 %v588_v8 }
  0x38   :  { %258 = vmatpush.msrb.mxu2 %v588_v8 }
  0x39   :  { %281 = vmatpush.msrb.mxu3 %v588_v8  ;;  %236 = vmatpush.msrb.mxu1 %v594_v9 }
  0x3a   :  { %259 = vmatpush.msrb.mxu2 %v594_v9 }
  0x3b   :  { %282 = vmatpush.msrb.mxu3 %v594_v9  ;;  %237 = vmatpush.msrb.mxu1 %v600_v10 }
  0x3c   :  { %260 = vmatpush.msrb.mxu2 %v600_v10 }
  0x3d   :  { %283 = vmatpush.msrb.mxu3 %v600_v10  ;;  %238 = vmatpush.msrb.mxu1 %v606_v11 }
  0x3e   :  { %261 = vmatpush.msrb.mxu2 %v606_v11  ;;  %404 = vmatmul.msk.f32.gmra.mxu0 %vm70_vm0, %v58_v27 }
  0x3f   :  { %284 = vmatpush.msrb.mxu3 %v606_v11  ;;  %239 = vmatpush.msrb.mxu1 %v612_v12 }
  0x40   :  { %262 = vmatpush.msrb.mxu2 %v612_v12 }
  0x41   :  { %285 = vmatpush.msrb.mxu3 %v612_v12  ;;  %240 = vmatpush.msrb.mxu1 %v618_v13 }
  0x42   :  { %263 = vmatpush.msrb.mxu2 %v618_v13 }
  0x43   :  { %286 = vmatpush.msrb.mxu3 %v618_v13  ;;  %241 = vmatpush.msrb.mxu1 %v624_v14 }
  0x44   :  { %264 = vmatpush.msrb.mxu2 %v624_v14 }
  0x45   :  { %287 = vmatpush.msrb.mxu3 %v624_v14  ;;  %242 = vmatpush.msrb.mxu1 %v630_v15 }
  0x46   :  { %265 = vmatpush.msrb.mxu2 %v630_v15  ;;  %405 = vmatmul.msk.f32.gmra.mxu0 %vm70_vm0, %v59_v33 }
  0x47   :  { %288 = vmatpush.msrb.mxu3 %v630_v15  ;;  %243 = vmatpush.msrb.mxu1 %v636_v16 }
  0x48   :  { %266 = vmatpush.msrb.mxu2 %v636_v16 }
  0x49   :  { %289 = vmatpush.msrb.mxu3 %v636_v16  ;;  %244 = vmatpush.msrb.mxu1 %v642_v17 }
  0x4a   :  { %267 = vmatpush.msrb.mxu2 %v642_v17 }
  0x4b   :  { %290 = vmatpush.msrb.mxu3 %v642_v17  ;;  %245 = vmatpush.msrb.mxu1 %v648_v18 }
  0x4c   :  { %268 = vmatpush.msrb.mxu2 %v648_v18 }
  0x4d   :  { %291 = vmatpush.msrb.mxu3 %v648_v18  ;;  %322 = vmatpush.msra.mxu1 %v559_v0  ;;  %v353_v0 = vld [vmem:[#allocation6 + $0x50] sm:$0xff] }
  0x4e   :  { %406 = vmatmul.msk.f32.gmra.mxu0 %vm70_vm0, %v60_v39 }
  0x4f   :  { %323 = vmatpush.msra.mxu1 %v561_v1  ;;  %v352_v1 = vld [vmem:[#allocation6 + $0x48] sm:$0xff] }
  0x51   :  { %324 = vmatpush.msra.mxu1 %v565_v2 }
  0x53   :  { %325 = vmatpush.msra.mxu1 %v570_v3  ;;  %v351_v3 = vld [vmem:[#allocation6 + $0x40] sm:$0xff] }
  0x55   :  { %326 = vmatpush.msra.mxu1 %v583_v7 }
  0x56   :  { %407 = vmatmul.msk.f32.gmra.mxu0 %vm70_vm0, %v61_v45 }
  0x57   :  { %327 = vmatpush.msra.mxu1 %v588_v8 }
  0x59   :  { %328 = vmatpush.msra.mxu1 %v594_v9 }
  0x5b   :  { %329 = vmatpush.msra.mxu1 %v600_v10 }
  0x5d   :  { %330 = vmatpush.msra.mxu1 %v606_v11  ;;  %v347_v11 = vld [vmem:[#allocation6 + $0x20] sm:$0xff] }
  0x5e   :  { %408 = vmatmul.msk.f32.gmra.mxu0 %vm70_vm0, %v62_v46 }
  0x5f   :  { %331 = vmatpush.msra.mxu1 %v612_v12  ;;  %v346_v12 = vld [vmem:[#allocation6 + $0x18] sm:$0xff] }
  0x61   :  { %332 = vmatpush.msra.mxu1 %v618_v13  ;;  %v345_v13 = vld [vmem:[#allocation6 + $0x10] sm:$0xff] }
  0x63   :  { %333 = vmatpush.msra.mxu1 %v624_v14  ;;  %v344_v14 = vld [vmem:[#allocation6 + $0x8] sm:$0xff] }
  0x65   :  { %334 = vmatpush.msra.mxu1 %v630_v15  ;;  %v343_v15 = vld [vmem:[#allocation6] sm:$0xff] }
  0x66   :  { %409 = vmatmul.msk.f32.gmra.mxu0 %vm70_vm0, %v63_v52 }
  0x67   :  { %335 = vmatpush.msra.mxu1 %v636_v16 }
  0x69   :  { %336 = vmatpush.msra.mxu1 %v642_v17 }
  0x6b   :  { %337 = vmatpush.msra.mxu1 %v648_v18 }
  0x90   :  { %v112_v22 = vpop.f32.mrf.mxu0 }
  0x91   :  { %v113_v23 = vadd.f32 %v736_v21, %v112_v22 }
  0xa9   :  { %v178_v24 = vpop.f32.mrf.mxu1 }
  0xaa   :  { %v179_v25 = vadd.f32 %v178_v24, %v113_v23 }
  0xac   :  { %418 = vtanh.f32 %v179_v25 }
  0xb2   :  { %v419_v26 = vpop.eup %418 }
  0xb3   :  { %200 = vmatmul.f32.vlgmr.msra.gmra.mxu2 %v419_v26  ;;  %v115_v28 = vpop.f32.mrf.mxu0 }
  0xb4   :  { %v116_v29 = vadd.f32 %v736_v21, %v115_v28  ;;  %363 = vmatpush.msra.mxu2 %v358_v58 }
  0xb6   :  { %364 = vmatpush.msra.mxu2 %v357_v59 }
  0xb8   :  { %365 = vmatpush.msra.mxu2 %v356_v61 }
  0xba   :  { %366 = vmatpush.msra.mxu2 %v355_v62 }
  0xbb   :  { %v118_v34 = vpop.f32.mrf.mxu0 }
  0xbc   :  { %v119_v35 = vadd.f32 %v736_v21, %v118_v34  ;;  %367 = vmatpush.msra.mxu2 %v354_v63 }
  0xbe   :  { %368 = vmatpush.msra.mxu2 %v353_v0 }
  0xc0   :  { %369 = vmatpush.msra.mxu2 %v352_v1 }
  0xc2   :  { %370 = vmatpush.msra.mxu2 %v351_v3 }
  0xc3   :  { %v121_v40 = vpop.f32.mrf.mxu0 }
  0xc4   :  { %v122_v41 = vadd.f32 %v736_v21, %v121_v40  ;;  %371 = vmatpush.msra.mxu2 %v350_v4 }
  0xc6   :  { %372 = vmatpush.msra.mxu2 %v349_v5 }
  0xc8   :  { %373 = vmatpush.msra.mxu2 %v348_v6 }
  0xca   :  { %374 = vmatpush.msra.mxu2 %v347_v11 }
  0xcb   :  { %v124_v47 = vpop.f32.mrf.mxu0 }
  0xcc   :  { %v125_v48 = vadd.f32 %v736_v21, %v124_v47  ;;  %375 = vmatpush.msra.mxu2 %v346_v12 }
  0xce   :  { %376 = vmatpush.msra.mxu2 %v345_v13 }
  0xd0   :  { %377 = vmatpush.msra.mxu2 %v344_v14 }
  0xd2   :  { %378 = vmatpush.msra.mxu2 %v343_v15 }
  0xd3   :  { %v127_v53 = vpop.f32.mrf.mxu0 }
  0xd4   :  { %v128_v54 = vadd.f32 %v736_v21, %v127_v53 }
  0xdb   :  { %v130_v60 = vpop.f32.mrf.mxu0 }
  0xdc   :  { %v131_v7 = vadd.f32 %v736_v21, %v130_v60 }
  0xe3   :  { %v133_v2 = vpop.f32.mrf.mxu0 }
  0xe4   :  { %v134_v16 = vadd.f32 %v736_v21, %v133_v2 }
 0x136   :  { %v201_v30 = vpop.f32.mrf.mxu2 }
 0x137   :  { %v202_v31 = vadd.f32 %v201_v30, %v116_v29 }
 0x139   :  { %420 = vtanh.f32 %v202_v31 }
 0x13f   :  { %v421_v32 = vpop.eup %420 }
 0x140   :  { %223 = vmatmul.f32.vlgmr.msra.gmra.mxu3 %v421_v32 }
 0x1c3   :  { %v224_v36 = vpop.f32.mrf.mxu3 }
 0x1c4   :  { %v225_v37 = vadd.f32 %v224_v36, %v119_v35 }
 0x1c6   :  { %422 = vtanh.f32 %v225_v37 }
 0x1cc   :  { %v423_v38 = vpop.eup %422 }
 0x1cd   :  { %246 = vmatmul.f32.vlgmr.msrb.gmra.mxu1 %v423_v38 }
 0x24a   :  { %v247_v42 = vpop.f32.mrf.mxu1 }
 0x24b   :  { %v248_v43 = vadd.f32 %v247_v42, %v122_v41 }
 0x24d   :  { %424 = vtanh.f32 %v248_v43 }
 0x253   :  { %v425_v44 = vpop.eup %424 }
 0x254   :  { %269 = vmatmul.f32.vlgmr.msrb.gmra.mxu2 %v425_v44 }
 0x2d7   :  { %v270_v49 = vpop.f32.mrf.mxu2 }
 0x2d8   :  { %v271_v50 = vadd.f32 %v270_v49, %v125_v48 }
 0x2da   :  { %426 = vtanh.f32 %v271_v50 }
 0x2e0   :  { %v427_v51 = vpop.eup %426 }
 0x2e1   :  { %292 = vmatmul.f32.vlgmr.msrb.gmra.mxu3 %v427_v51 }
 0x364   :  { %v293_v55 = vpop.f32.mrf.mxu3 }
 0x365   :  { %v294_v56 = vadd.f32 %v293_v55, %v128_v54 }
 0x367   :  { %428 = vtanh.f32 %v294_v56 }
 0x36d   :  { %v429_v57 = vpop.eup %428 }
 0x36e   :  { %315 = vmatmul.f32.vlgmr.msrb.gmra.mxu0 %v429_v57 }
 0x3eb   :  { %v316_v8 = vpop.f32.mrf.mxu0 }
 0x3ec   :  { %v317_v9 = vadd.f32 %v316_v8, %v131_v7 }
 0x3ee   :  { %430 = vtanh.f32 %v317_v9 }
 0x3f4   :  { %v431_v10 = vpop.eup %430 }
 0x3f5   :  { %338 = vmatmul.f32.vlgmr.msra.gmra.mxu1 %v431_v10 }
 0x472   :  { %v339_v17 = vpop.f32.mrf.mxu1 }
 0x473   :  { %v340_v18 = vadd.f32 %v339_v17, %v134_v16 }
 0x475   :  { %432 = vtanh.f32 %v340_v18 }
 0x47b   :  { %v433_v19 = vpop.eup %432 }
 0x47c   :  { %379 = vmatmul.f32.vlgmr.msra.gmra.mxu2 %v433_v19 }
 0x4ff   :  { %v380_v22 = vpop.f32.mrf.mxu2 }
 0x500   :  { %v381_v23 = vadd.f32 %v417_v20, %v380_v22 }
 0x502   :  { %383 = vst [vmem:[#allocation8] sm:$0xff] %v381_v23 }
 0x503   :  { %394 = dma.vmem_to_hbm [thread:$0]  %s390_s29, 128, %s392_s8, [#allocation5]  }
 0x504   :  { %510 = dma.done.wait [#allocation5], 128  }
 0x505   :  { %511 = vsyncadd [#allocation5], 4294967168 }
 0x506   :  { %399 = vsyncpa [#allocation4], 1 }
 0x507   :  { %400 = vsyncpa [#allocation7], 1 }
 0x508   :  { %401 = vsyncpa [#allocation5], 1 }

</bundles_post_ra>
